<compile_context>
chip_gen: v7x
topology: tpu7x:2x2x1
jax: 0.10.0
libtpu: 0.0.40
codegen_flags: <defaults>
</compile_context>

<pallas_src>
import functools

import jax
import jax.numpy as jnp
from jax import lax
from jax.experimental import pallas as pl
from jax.experimental.pallas import tpu as pltpu

LANE = 128          # TPU lane width: output-channel dim is padded to this
MAX_M_TILE = 512    # upper bound on patch rows per grid step (bounds VMEM)


def _round_up(x, m):
    return (x + m - 1) // m * m


# ---------------------------------------------------------------------------
# Pallas kernel: fused (TM,K) @ (K,128) matmul + bias + activation
# ---------------------------------------------------------------------------
def _gemm_bias_act_kernel(x_ref, w_ref, b_ref, o_ref, *, act):
    acc = jnp.dot(x_ref[...], w_ref[...], preferred_element_type=jnp.float32)
    acc = acc + b_ref[...]                       # (TM, Npad) + (1, Npad)
    if act == "relu":
        acc = jnp.maximum(acc, 0.0)
    elif act == "sigmoid":
        # exp and reciprocal both route to the EUP slot (VPU stays free)
        acc = pl.reciprocal(1.0 + jnp.exp(-acc), approx=True)
    o_ref[...] = acc.astype(o_ref.dtype)


def gemm_bias_act(patches, w2d, b2d, n_out, act, out_dtype=jnp.bfloat16):
    """patches:(M,K) bf16   w2d:(K,Npad) bf16   b2d:(1,Npad) f32
    -> (M, n_out) out_dtype."""
    M, K = patches.shape
    K2, Npad = w2d.shape
    assert K == K2 and Npad % LANE == 0

    # Balanced M tiling: minimal padding, bf16-sublane-friendly (multiple of 16).
    n_steps = (M + MAX_M_TILE - 1) // MAX_M_TILE
    TM = _round_up(-(-M // n_steps), 16)
    Mpad = _round_up(M, TM)

    xp = patches.astype(jnp.bfloat16)
    if Mpad != M:
        xp = jnp.pad(xp, ((0, Mpad - M), (0, 0)))

    out_itemsize = jnp.dtype(out_dtype).itemsize
    cost = pl.CostEstimate(
        flops=2 * Mpad * K * Npad,
        transcendentals=(2 * Mpad * Npad) if act == "sigmoid" else 0,
        bytes_accessed=(Mpad * K + K * Npad) * 2 + Npad * 4
        + Mpad * Npad * out_itemsize,
    )

    out = pl.pallas_call(
        functools.partial(_gemm_bias_act_kernel, act=act),
        grid=(Mpad // TM,),
        in_specs=[
            pl.BlockSpec((TM, K), lambda i: (i, 0)),     # patches: tiled over M
            pl.BlockSpec((K, Npad), lambda i: (0, 0)),   # weights: VMEM-resident
            pl.BlockSpec((1, Npad), lambda i: (0, 0)),   # bias:    VMEM-resident
        ],
        out_specs=pl.BlockSpec((TM, Npad), lambda i: (i, 0)),
        out_shape=jax.ShapeDtypeStruct((Mpad, Npad), out_dtype),
        compiler_params=pltpu.CompilerParams(
            dimension_semantics=("parallel",),           # shards M across TCs (v7x)
            vmem_limit_bytes=32 * 1024 * 1024,           # safe on v5e/v6e/v7x
        ),
        cost_estimate=cost,
    )(xp, w2d, b2d)
    return out[:M, :n_out]


# ---------------------------------------------------------------------------
# Glue (plain JAX): patch extraction + layer wrappers
# ---------------------------------------------------------------------------
def _im2col(x_nhwc, kh, kw, stride):
    """x_nhwc already padded. Returns ((B*Ho*Wo, kh*kw*C), Ho, Wo)."""
    B, H, W, C = x_nhwc.shape
    Ho = (H - kh) // stride + 1
    Wo = (W - kw) // stride + 1
    cols = []
    for i in range(kh):
        for j in range(kw):
            cols.append(
                x_nhwc[:, i:i + stride * (Ho - 1) + 1:stride,
                       j:j + stride * (Wo - 1) + 1:stride, :])
    patches = jnp.stack(cols, axis=3)            # (B, Ho, Wo, kh*kw, C)
    return patches.reshape(B * Ho * Wo, kh * kw * C), Ho, Wo


def conv2d(x_nhwc, layer, *, cout, stride, pad, act, out_dtype=jnp.bfloat16):
    """layer['w']: (9*Cin, 128) bf16, layer['b']: (1, 128) f32."""
    # TODO(synk): fuse halo-tile patch extraction into the Pallas kernel so
    # im2col patches are never materialized in HBM (only matters at large B/HW).
    B = x_nhwc.shape[0]
    xp = jnp.pad(x_nhwc, ((0, 0), (pad, pad), (pad, pad), (0, 0)))
    patches, Ho, Wo = _im2col(xp, 3, 3, stride)
    y = gemm_bias_act(patches, layer["w"], layer["b"], cout, act, out_dtype)
    return y.reshape(B, Ho, Wo, cout)


def conv_transpose2d_subpixel(x_nhwc, layer, *, cout, act,
                              out_dtype=jnp.bfloat16):
    """Sub-pixel decomposition of ConvTranspose2d(k=3, s=2, p=1, op=1).

    layer['w']: (4*Cin, 128) bf16 combined phase weights, layer['b']: (1, 128) f32.
    One GEMM over 2x2 patches of the undilated input, then pixel-shuffle.
    """
    B, H, W, Cin = x_nhwc.shape
    xp = jnp.pad(x_nhwc, ((0, 0), (0, 1), (0, 1), (0, 0)))   # right/bottom halo
    patches = jnp.concatenate(
        [xp[:, :H, :W, :], xp[:, :H, 1:, :],
         xp[:, 1:, :W, :], xp[:, 1:, 1:, :]], axis=-1)       # (B,H,W,4*Cin)
    patches = patches.reshape(B * H * W, 4 * Cin)
    y = gemm_bias_act(patches, layer["w"], layer["b"], 4 * cout, act, out_dtype)
    y = y.reshape(B, H, W, 2, 2, cout)                       # phases (p, q)
    y = jnp.transpose(y, (0, 1, 3, 2, 4, 5)).reshape(B, 2 * H, 2 * W, cout)
    return y


# ---------------------------------------------------------------------------
# Parameters: PyTorch-layout init + one-time GEMM-layout preparation
# ---------------------------------------------------------------------------
def init_params(key):
    def w_init(key, shape, fan_in):
        bound = 1.0 / jnp.sqrt(fan_in)
        return jax.random.uniform(key, shape, jnp.float32, -bound, bound)

    keys = jax.random.split(key, 12)
    p = {}
    p["e1_w"] = w_init(keys[0], (16, 3, 3, 3), 3 * 9)
    p["e1_b"] = w_init(keys[1], (16,), 3 * 9)
    p["e2_w"] = w_init(keys[2], (32, 16, 3, 3), 16 * 9)
    p["e2_b"] = w_init(keys[3], (32,), 16 * 9)
    p["e3_w"] = w_init(keys[4], (64, 32, 3, 3), 32 * 9)
    p["e3_b"] = w_init(keys[5], (64,), 32 * 9)
    p["d1_w"] = w_init(keys[6], (64, 32, 3, 3), 64 * 9)
    p["d1_b"] = w_init(keys[7], (32,), 64 * 9)
    p["d2_w"] = w_init(keys[8], (32, 16, 3, 3), 32 * 9)
    p["d2_b"] = w_init(keys[9], (16,), 32 * 9)
    p["d3_w"] = w_init(keys[10], (16, 3, 3, 3), 16 * 9)
    p["d3_b"] = w_init(keys[11], (3,), 16 * 9)
    return p


def prepare_params(params):
    """One-time reshape/cast/pad of weights into GEMM layout.

    Weights -> (K, 128) bf16 (lane-padded), bias -> (1, 128) f32.  Done once,
    outside jit, so the forward pass has zero per-call weight massaging.
    """

    def pad_lane(w2d, b1d):
        K, N = w2d.shape
        Npad = _round_up(N, LANE)
        w2d = jnp.pad(w2d, ((0, 0), (0, Npad - N)))
        b1d = jnp.pad(b1d, ((0, Npad - N),))
        return {"w": w2d.astype(jnp.bfloat16),
                "b": b1d.reshape(1, Npad).astype(jnp.float32)}

    def prep_conv(w, b):
        # w: (Cout, Cin, 3, 3) -> (9*Cin, Cout), matching im2col patch ordering
        Cout, Cin, kh, kw = w.shape
        w2d = jnp.transpose(w, (2, 3, 1, 0)).reshape(kh * kw * Cin, Cout)
        return pad_lane(w2d, b)

    def prep_deconv(wt, b):
        # wt: (Cin, Cout, 3, 3) PyTorch ConvTranspose2d weight.
        # Equivalent forward-conv kernel (flip + channel swap): (Cout, Cin, 3, 3)
        Cin, Cout = wt.shape[0], wt.shape[1]
        wc = jnp.transpose(wt[:, :, ::-1, ::-1], (1, 0, 2, 3))

        def blk(a, c):                      # (Cin, Cout) slice of wc[..., a, c]
            return jnp.transpose(wc[:, :, a, c], (1, 0))

        Z = jnp.zeros((Cin, Cout), wt.dtype)
        # rows: 2x2 input taps [(0,0),(0,1),(1,0),(1,1)]
        # cols: output phases  [(0,0),(0,1),(1,0),(1,1)]
        w2d = jnp.block([
            [blk(1, 1), blk(1, 0), blk(0, 1), blk(0, 0)],
            [Z,         blk(1, 2), Z,         blk(0, 2)],
            [Z,         Z,         blk(2, 1), blk(2, 0)],
            [Z,         Z,         Z,         blk(2, 2)],
        ])                                  # (4*Cin, 4*Cout)
        return pad_lane(w2d, jnp.tile(b, 4))

    return {
        "e1": prep_conv(params["e1_w"], params["e1_b"]),
        "e2": prep_conv(params["e2_w"], params["e2_b"]),
        "e3": prep_conv(params["e3_w"], params["e3_b"]),
        "d1": prep_deconv(params["d1_w"], params["d1_b"]),
        "d2": prep_deconv(params["d2_w"], params["d2_b"]),
        "d3": prep_deconv(params["d3_w"], params["d3_b"]),
    }


# ---------------------------------------------------------------------------
# Full forward pass (NCHW in, NCHW out — same as the PyTorch module)
# ---------------------------------------------------------------------------
def autoencoder_forward(x_nchw, prepped):
    x = jnp.transpose(x_nchw, (0, 2, 3, 1)).astype(jnp.bfloat16)  # NCHW -> NHWC
    # encoder
    x = conv2d(x, prepped["e1"], cout=16, stride=2, pad=1, act="relu")
    x = conv2d(x, prepped["e2"], cout=32, stride=2, pad=1, act="relu")
    x = conv2d(x, prepped["e3"], cout=64, stride=2, pad=1, act="relu")
    # decoder
    x = conv_transpose2d_subpixel(x, prepped["d1"], cout=32, act="relu")
    x = conv_transpose2d_subpixel(x, prepped["d2"], cout=16, act="relu")
    x = conv_transpose2d_subpixel(x, prepped["d3"], cout=3, act="sigmoid",
                                  out_dtype=jnp.float32)
    return jnp.transpose(x, (0, 3, 1, 2))                         # NHWC -> NCHW


# ---------------------------------------------------------------------------
# Pure-JAX f32 reference (original dilated ConvTranspose formulation)
# ---------------------------------------------------------------------------
def _ref_gemm(patches, w2d, b, act):
    y = patches @ w2d + b
    if act == "relu":
        return jnp.maximum(y, 0.0)
    return 1.0 / (1.0 + jnp.exp(-y))


def _ref_conv2d(x, w, b, stride, pad, act):
    Cout, Cin, kh, kw = w.shape
    xpd = jnp.pad(x, ((0, 0), (pad, pad), (pad, pad), (0, 0)))
    patches, Ho, Wo = _im2col(xpd, kh, kw, stride)
    w2d = jnp.transpose(w, (2, 3, 1, 0)).reshape(kh * kw * Cin, Cout)
    return _ref_gemm(patches, w2d, b, act).reshape(x.shape[0], Ho, Wo, Cout)


def _ref_conv_transpose2d(x, w, b, stride, pad, opad, act):
    Cin, Cout, kh, kw = w.shape
    lo = kh - 1 - pad
    hi = kh - 1 - pad + opad
    zero = jnp.array(0, dtype=x.dtype)
    xd = lax.pad(x, zero, [(0, 0, 0), (lo, hi, stride - 1),
                           (lo, hi, stride - 1), (0, 0, 0)])
    w_conv = jnp.transpose(w[:, :, ::-1, ::-1], (1, 0, 2, 3))
    patches, Ho, Wo = _im2col(xd, kh, kw, 1)
    w2d = jnp.transpose(w_conv, (2, 3, 1, 0)).reshape(kh * kw * Cin, Cout)
    return _ref_gemm(patches, w2d, b, act).reshape(x.shape[0], Ho, Wo, Cout)


def reference_forward(x_nchw, params):
    x = jnp.transpose(x_nchw, (0, 2, 3, 1))
    x = _ref_conv2d(x, params["e1_w"], params["e1_b"], 2, 1, "relu")
    x = _ref_conv2d(x, params["e2_w"], params["e2_b"], 2, 1, "relu")
    x = _ref_conv2d(x, params["e3_w"], params["e3_b"], 2, 1, "relu")
    x = _ref_conv_transpose2d(x, params["d1_w"], params["d1_b"], 2, 1, 1, "relu")
    x = _ref_conv_transpose2d(x, params["d2_w"], params["d2_b"], 2, 1, 1, "relu")
    x = _ref_conv_transpose2d(x, params["d3_w"], params["d3_b"], 2, 1, 1, "sigmoid")
    return jnp.transpose(x, (0, 3, 1, 2))


if __name__ == "__main__":
    key = jax.random.PRNGKey(0)
    k_param, k_data = jax.random.split(key)
    params = init_params(k_param)
    prepped = prepare_params(params)          # one-time weight prep (outside jit)

    # Small input consistent with the module: (B=2, C=3, H=16, W=16), NCHW.
    x = jax.random.uniform(k_data, (2, 3, 16, 16), jnp.float32)

    fwd = jax.jit(autoencoder_forward)
    out = fwd(x, prepped)
    jax.block_until_ready(out)

    assert out.shape == (2, 3, 16, 16), out.shape
    # sigmoid range (small slack for bf16 operands + approx reciprocal)
    assert bool(jnp.all((out >= -1e-3) & (out <= 1.0 + 1e-2)))

    # numerical check against the pure-JAX f32 reference (bf16 MXU operands)
    ref = jax.jit(reference_forward)(x, params)
    jax.block_until_ready(ref)
    max_err = float(jnp.max(jnp.abs(out.astype(jnp.float32) - ref)))
    assert max_err < 5e-2, f"max abs err vs reference = {max_err}"

    print("KERNEL_OK")
</pallas_src>

<mosaic_0001>
module attributes {stable_mosaic.version = 11 : i64} {
  func.func @_gemm_bias_act_kernel(%arg0: i32, %arg1: memref<128x27xbf16, #tpu.memory_space<vmem>>, %arg2: memref<27x128xbf16, #tpu.memory_space<vmem>>, %arg3: memref<1x128xf32, #tpu.memory_space<vmem>>, %arg4: memref<128x128xbf16, #tpu.memory_space<vmem>>) attributes {dimension_semantics = [#tpu.dimension_semantics<parallel>], iteration_bounds = array<i64: 1>, scalar_prefetch = 0 : i64, scratch_operands = 0 : i64, tpu.core_type = #tpu.core_type<tc>, window_params = [{transform_indices = @transform_0, window_bounds = array<i64: 128, 27>}, {pipeline_mode = #tpu.pipeline_mode<synchronous>, transform_indices = @transform_1, window_bounds = array<i64: 27, 128>}, {pipeline_mode = #tpu.pipeline_mode<synchronous>, transform_indices = @transform_2, window_bounds = array<i64: 1, 128>}, {transform_indices = @transform_3, window_bounds = array<i64: 128, 128>}]} {
    %c0 = arith.constant 0 : index
    %c0_0 = arith.constant 0 : index
    %0 = vector.load %arg1[%c0, %c0_0] : memref<128x27xbf16, #tpu.memory_space<vmem>>, vector<128x27xbf16>
    %c0_1 = arith.constant 0 : index
    %c0_2 = arith.constant 0 : index
    %1 = vector.load %arg2[%c0_1, %c0_2] : memref<27x128xbf16, #tpu.memory_space<vmem>>, vector<27x128xbf16>
    %cst = arith.constant dense<0.000000e+00> : vector<128x128xf32>
    %2 = tpu.matmul %0, %1, %cst {dimension_numbers = #tpu.dot_dimension_numbers<[1], [0], [0], [1], [0, 0, 1, 1], [], []>} : vector<128x27xbf16>, vector<27x128xbf16>, vector<128x128xf32> -> vector<128x128xf32>
    %c0_3 = arith.constant 0 : index
    %c0_4 = arith.constant 0 : index
    %3 = vector.load %arg3[%c0_3, %c0_4] : memref<1x128xf32, #tpu.memory_space<vmem>>, vector<1x128xf32>
    %4 = vector.broadcast %3 : vector<1x128xf32> to vector<128x128xf32>
    %5 = arith.addf %2, %4 : vector<128x128xf32>
    %cst_5 = arith.constant 0.000000e+00 : f32
    %6 = vector.broadcast %cst_5 : f32 to vector<128x128xf32>
    %7 = arith.maximumf %5, %6 : vector<128x128xf32>
    %8 = arith.truncf %7 : vector<128x128xf32> to vector<128x128xbf16>
    %c0_6 = arith.constant 0 : index
    %c0_7 = arith.constant 0 : index
    %9 = vector.load %arg4[%c0_6, %c0_7] : memref<128x128xbf16, #tpu.memory_space<vmem>>, vector<128x128xbf16>
    tpu.vector_store %arg4[%c0_6, %c0_7], %8 {strides = array<i32>} : memref<128x128xbf16, #tpu.memory_space<vmem>>, vector<128x128xbf16>,
    return
  }
  func.func @transform_0(%arg0: i32) -> (i32, i32) {
    %c0_i32 = arith.constant 0 : i32
    %c0_i32_0 = arith.constant 0 : i32
    return %arg0, %c0_i32 : i32, i32
  }
  func.func @transform_1(%arg0: i32) -> (i32, i32) {
    %c0_i32 = arith.constant 0 : i32
    %c0_i32_0 = arith.constant 0 : i32
    %c0_i32_1 = arith.constant 0 : i32
    return %c0_i32, %c0_i32_0 : i32, i32
  }
  func.func @transform_2(%arg0: i32) -> (i32, i32) {
    %c0_i32 = arith.constant 0 : i32
    %c0_i32_0 = arith.constant 0 : i32
    %c0_i32_1 = arith.constant 0 : i32
    return %c0_i32, %c0_i32_0 : i32, i32
  }
  func.func @transform_3(%arg0: i32) -> (i32, i32) {
    %c0_i32 = arith.constant 0 : i32
    %c0_i32_0 = arith.constant 0 : i32
    return %arg0, %c0_i32 : i32, i32
  }
}

module attributes {stable_mosaic.version = 11 : i64} {
  func.func @_gemm_bias_act_kernel(%arg0: i32, %arg1: memref<32x144xbf16, #tpu.memory_space<vmem>>, %arg2: memref<144x128xbf16, #tpu.memory_space<vmem>>, %arg3: memref<1x128xf32, #tpu.memory_space<vmem>>, %arg4: memref<32x128xbf16, #tpu.memory_space<vmem>>) attributes {dimension_semantics = [#tpu.dimension_semantics<parallel>], iteration_bounds = array<i64: 1>, scalar_prefetch = 0 : i64, scratch_operands = 0 : i64, tpu.core_type = #tpu.core_type<tc>, window_params = [{transform_indices = @transform_0, window_bounds = array<i64: 32, 144>}, {pipeline_mode = #tpu.pipeline_mode<synchronous>, transform_indices = @transform_1, window_bounds = array<i64: 144, 128>}, {pipeline_mode = #tpu.pipeline_mode<synchronous>, transform_indices = @transform_2, window_bounds = array<i64: 1, 128>}, {transform_indices = @transform_3, window_bounds = array<i64: 32, 128>}]} {
    %c0 = arith.constant 0 : index
    %c0_0 = arith.constant 0 : index
    %0 = vector.load %arg1[%c0, %c0_0] : memref<32x144xbf16, #tpu.memory_space<vmem>>, vector<32x144xbf16>
    %c0_1 = arith.constant 0 : index
    %c0_2 = arith.constant 0 : index
    %1 = vector.load %arg2[%c0_1, %c0_2] : memref<144x128xbf16, #tpu.memory_space<vmem>>, vector<144x128xbf16>
    %cst = arith.constant dense<0.000000e+00> : vector<32x128xf32>
    %2 = tpu.matmul %0, %1, %cst {dimension_numbers = #tpu.dot_dimension_numbers<[1], [0], [0], [1], [0, 0, 1, 1], [], []>} : vector<32x144xbf16>, vector<144x128xbf16>, vector<32x128xf32> -> vector<32x128xf32>
    %c0_3 = arith.constant 0 : index
    %c0_4 = arith.constant 0 : index
    %3 = vector.load %arg3[%c0_3, %c0_4] : memref<1x128xf32, #tpu.memory_space<vmem>>, vector<1x128xf32>
    %4 = vector.broadcast %3 : vector<1x128xf32> to vector<32x128xf32>
    %5 = arith.addf %2, %4 : vector<32x128xf32>
    %cst_5 = arith.constant 0.000000e+00 : f32
    %6 = vector.broadcast %cst_5 : f32 to vector<32x128xf32>
    %7 = arith.maximumf %5, %6 : vector<32x128xf32>
    %8 = arith.truncf %7 : vector<32x128xf32> to vector<32x128xbf16>
    %c0_6 = arith.constant 0 : index
    %c0_7 = arith.constant 0 : index
    %9 = vector.load %arg4[%c0_6, %c0_7] : memref<32x128xbf16, #tpu.memory_space<vmem>>, vector<32x128xbf16>
    tpu.vector_store %arg4[%c0_6, %c0_7], %8 {strides = array<i32>} : memref<32x128xbf16, #tpu.memory_space<vmem>>, vector<32x128xbf16>,
    return
  }
  func.func @transform_0(%arg0: i32) -> (i32, i32) {
    %c0_i32 = arith.constant 0 : i32
    %c0_i32_0 = arith.constant 0 : i32
    return %arg0, %c0_i32 : i32, i32
  }
  func.func @transform_1(%arg0: i32) -> (i32, i32) {
    %c0_i32 = arith.constant 0 : i32
    %c0_i32_0 = arith.constant 0 : i32
    %c0_i32_1 = arith.constant 0 : i32
    return %c0_i32, %c0_i32_0 : i32, i32
  }
  func.func @transform_2(%arg0: i32) -> (i32, i32) {
    %c0_i32 = arith.constant 0 : i32
    %c0_i32_0 = arith.constant 0 : i32
    %c0_i32_1 = arith.constant 0 : i32
    return %c0_i32, %c0_i32_0 : i32, i32
  }
  func.func @transform_3(%arg0: i32) -> (i32, i32) {
    %c0_i32 = arith.constant 0 : i32
    %c0_i32_0 = arith.constant 0 : i32
    return %arg0, %c0_i32 : i32, i32
  }
}

module attributes {stable_mosaic.version = 11 : i64} {
  func.func @_gemm_bias_act_kernel(%arg0: i32, %arg1: memref<16x288xbf16, #tpu.memory_space<vmem>>, %arg2: memref<288x128xbf16, #tpu.memory_space<vmem>>, %arg3: memref<1x128xf32, #tpu.memory_space<vmem>>, %arg4: memref<16x128xbf16, #tpu.memory_space<vmem>>) attributes {dimension_semantics = [#tpu.dimension_semantics<parallel>], iteration_bounds = array<i64: 1>, scalar_prefetch = 0 : i64, scratch_operands = 0 : i64, tpu.core_type = #tpu.core_type<tc>, window_params = [{transform_indices = @transform_0, window_bounds = array<i64: 16, 288>}, {pipeline_mode = #tpu.pipeline_mode<synchronous>, transform_indices = @transform_1, window_bounds = array<i64: 288, 128>}, {pipeline_mode = #tpu.pipeline_mode<synchronous>, transform_indices = @transform_2, window_bounds = array<i64: 1, 128>}, {transform_indices = @transform_3, window_bounds = array<i64: 16, 128>}]} {
    %c0 = arith.constant 0 : index
    %c0_0 = arith.constant 0 : index
    %0 = vector.load %arg1[%c0, %c0_0] : memref<16x288xbf16, #tpu.memory_space<vmem>>, vector<16x288xbf16>
    %c0_1 = arith.constant 0 : index
    %c0_2 = arith.constant 0 : index
    %1 = vector.load %arg2[%c0_1, %c0_2] : memref<288x128xbf16, #tpu.memory_space<vmem>>, vector<288x128xbf16>
    %cst = arith.constant dense<0.000000e+00> : vector<16x128xf32>
    %2 = tpu.matmul %0, %1, %cst {dimension_numbers = #tpu.dot_dimension_numbers<[1], [0], [0], [1], [0, 0, 1, 1], [], []>} : vector<16x288xbf16>, vector<288x128xbf16>, vector<16x128xf32> -> vector<16x128xf32>
    %c0_3 = arith.constant 0 : index
    %c0_4 = arith.constant 0 : index
    %3 = vector.load %arg3[%c0_3, %c0_4] : memref<1x128xf32, #tpu.memory_space<vmem>>, vector<1x128xf32>
    %4 = vector.broadcast %3 : vector<1x128xf32> to vector<16x128xf32>
    %5 = arith.addf %2, %4 : vector<16x128xf32>
    %cst_5 = arith.constant 0.000000e+00 : f32
    %6 = vector.broadcast %cst_5 : f32 to vector<16x128xf32>
    %7 = arith.maximumf %5, %6 : vector<16x128xf32>
    %8 = arith.truncf %7 : vector<16x128xf32> to vector<16x128xbf16>
    %c0_6 = arith.constant 0 : index
    %c0_7 = arith.constant 0 : index
    %9 = vector.load %arg4[%c0_6, %c0_7] : memref<16x128xbf16, #tpu.memory_space<vmem>>, vector<16x128xbf16>
    tpu.vector_store %arg4[%c0_6, %c0_7], %8 {strides = array<i32>} : memref<16x128xbf16, #tpu.memory_space<vmem>>, vector<16x128xbf16>,
    return
  }
  func.func @transform_0(%arg0: i32) -> (i32, i32) {
    %c0_i32 = arith.constant 0 : i32
    %c0_i32_0 = arith.constant 0 : i32
    return %arg0, %c0_i32 : i32, i32
  }
  func.func @transform_1(%arg0: i32) -> (i32, i32) {
    %c0_i32 = arith.constant 0 : i32
    %c0_i32_0 = arith.constant 0 : i32
    %c0_i32_1 = arith.constant 0 : i32
    return %c0_i32, %c0_i32_0 : i32, i32
  }
  func.func @transform_2(%arg0: i32) -> (i32, i32) {
    %c0_i32 = arith.constant 0 : i32
    %c0_i32_0 = arith.constant 0 : i32
    %c0_i32_1 = arith.constant 0 : i32
    return %c0_i32, %c0_i32_0 : i32, i32
  }
  func.func @transform_3(%arg0: i32) -> (i32, i32) {
    %c0_i32 = arith.constant 0 : i32
    %c0_i32_0 = arith.constant 0 : i32
    return %arg0, %c0_i32 : i32, i32
  }
}

module attributes {stable_mosaic.version = 11 : i64} {
  func.func @_gemm_bias_act_kernel(%arg0: i32, %arg1: memref<16x256xbf16, #tpu.memory_space<vmem>>, %arg2: memref<256x128xbf16, #tpu.memory_space<vmem>>, %arg3: memref<1x128xf32, #tpu.memory_space<vmem>>, %arg4: memref<16x128xbf16, #tpu.memory_space<vmem>>) attributes {dimension_semantics = [#tpu.dimension_semantics<parallel>], iteration_bounds = array<i64: 1>, scalar_prefetch = 0 : i64, scratch_operands = 0 : i64, tpu.core_type = #tpu.core_type<tc>, window_params = [{transform_indices = @transform_0, window_bounds = array<i64: 16, 256>}, {pipeline_mode = #tpu.pipeline_mode<synchronous>, transform_indices = @transform_1, window_bounds = array<i64: 256, 128>}, {pipeline_mode = #tpu.pipeline_mode<synchronous>, transform_indices = @transform_2, window_bounds = array<i64: 1, 128>}, {transform_indices = @transform_3, window_bounds = array<i64: 16, 128>}]} {
    %c0 = arith.constant 0 : index
    %c0_0 = arith.constant 0 : index
    %0 = vector.load %arg1[%c0, %c0_0] : memref<16x256xbf16, #tpu.memory_space<vmem>>, vector<16x256xbf16>
    %c0_1 = arith.constant 0 : index
    %c0_2 = arith.constant 0 : index
    %1 = vector.load %arg2[%c0_1, %c0_2] : memref<256x128xbf16, #tpu.memory_space<vmem>>, vector<256x128xbf16>
    %cst = arith.constant dense<0.000000e+00> : vector<16x128xf32>
    %2 = tpu.matmul %0, %1, %cst {dimension_numbers = #tpu.dot_dimension_numbers<[1], [0], [0], [1], [0, 0, 1, 1], [], []>} : vector<16x256xbf16>, vector<256x128xbf16>, vector<16x128xf32> -> vector<16x128xf32>
    %c0_3 = arith.constant 0 : index
    %c0_4 = arith.constant 0 : index
    %3 = vector.load %arg3[%c0_3, %c0_4] : memref<1x128xf32, #tpu.memory_space<vmem>>, vector<1x128xf32>
    %4 = vector.broadcast %3 : vector<1x128xf32> to vector<16x128xf32>
    %5 = arith.addf %2, %4 : vector<16x128xf32>
    %cst_5 = arith.constant 0.000000e+00 : f32
    %6 = vector.broadcast %cst_5 : f32 to vector<16x128xf32>
    %7 = arith.maximumf %5, %6 : vector<16x128xf32>
    %8 = arith.truncf %7 : vector<16x128xf32> to vector<16x128xbf16>
    %c0_6 = arith.constant 0 : index
    %c0_7 = arith.constant 0 : index
    %9 = vector.load %arg4[%c0_6, %c0_7] : memref<16x128xbf16, #tpu.memory_space<vmem>>, vector<16x128xbf16>
    tpu.vector_store %arg4[%c0_6, %c0_7], %8 {strides = array<i32>} : memref<16x128xbf16, #tpu.memory_space<vmem>>, vector<16x128xbf16>,
    return
  }
  func.func @transform_0(%arg0: i32) -> (i32, i32) {
    %c0_i32 = arith.constant 0 : i32
    %c0_i32_0 = arith.constant 0 : i32
    return %arg0, %c0_i32 : i32, i32
  }
  func.func @transform_1(%arg0: i32) -> (i32, i32) {
    %c0_i32 = arith.constant 0 : i32
    %c0_i32_0 = arith.constant 0 : i32
    %c0_i32_1 = arith.constant 0 : i32
    return %c0_i32, %c0_i32_0 : i32, i32
  }
  func.func @transform_2(%arg0: i32) -> (i32, i32) {
    %c0_i32 = arith.constant 0 : i32
    %c0_i32_0 = arith.constant 0 : i32
    %c0_i32_1 = arith.constant 0 : i32
    return %c0_i32, %c0_i32_0 : i32, i32
  }
  func.func @transform_3(%arg0: i32) -> (i32, i32) {
    %c0_i32 = arith.constant 0 : i32
    %c0_i32_0 = arith.constant 0 : i32
    return %arg0, %c0_i32 : i32, i32
  }
}

module attributes {stable_mosaic.version = 11 : i64} {
  func.func @_gemm_bias_act_kernel(%arg0: i32, %arg1: memref<32x128xbf16, #tpu.memory_space<vmem>>, %arg2: memref<128x128xbf16, #tpu.memory_space<vmem>>, %arg3: memref<1x128xf32, #tpu.memory_space<vmem>>, %arg4: memref<32x128xbf16, #tpu.memory_space<vmem>>) attributes {dimension_semantics = [#tpu.dimension_semantics<parallel>], iteration_bounds = array<i64: 1>, scalar_prefetch = 0 : i64, scratch_operands = 0 : i64, tpu.core_type = #tpu.core_type<tc>, window_params = [{transform_indices = @transform_0, window_bounds = array<i64: 32, 128>}, {pipeline_mode = #tpu.pipeline_mode<synchronous>, transform_indices = @transform_1, window_bounds = array<i64: 128, 128>}, {pipeline_mode = #tpu.pipeline_mode<synchronous>, transform_indices = @transform_2, window_bounds = array<i64: 1, 128>}, {transform_indices = @transform_3, window_bounds = array<i64: 32, 128>}]} {
    %c0 = arith.constant 0 : index
    %c0_0 = arith.constant 0 : index
    %0 = vector.load %arg1[%c0, %c0_0] : memref<32x128xbf16, #tpu.memory_space<vmem>>, vector<32x128xbf16>
    %c0_1 = arith.constant 0 : index
    %c0_2 = arith.constant 0 : index
    %1 = vector.load %arg2[%c0_1, %c0_2] : memref<128x128xbf16, #tpu.memory_space<vmem>>, vector<128x128xbf16>
    %cst = arith.constant dense<0.000000e+00> : vector<32x128xf32>
    %2 = tpu.matmul %0, %1, %cst {dimension_numbers = #tpu.dot_dimension_numbers<[1], [0], [0], [1], [0, 0, 1, 1], [], []>} : vector<32x128xbf16>, vector<128x128xbf16>, vector<32x128xf32> -> vector<32x128xf32>
    %c0_3 = arith.constant 0 : index
    %c0_4 = arith.constant 0 : index
    %3 = vector.load %arg3[%c0_3, %c0_4] : memref<1x128xf32, #tpu.memory_space<vmem>>, vector<1x128xf32>
    %4 = vector.broadcast %3 : vector<1x128xf32> to vector<32x128xf32>
    %5 = arith.addf %2, %4 : vector<32x128xf32>
    %cst_5 = arith.constant 0.000000e+00 : f32
    %6 = vector.broadcast %cst_5 : f32 to vector<32x128xf32>
    %7 = arith.maximumf %5, %6 : vector<32x128xf32>
    %8 = arith.truncf %7 : vector<32x128xf32> to vector<32x128xbf16>
    %c0_6 = arith.constant 0 : index
    %c0_7 = arith.constant 0 : index
    %9 = vector.load %arg4[%c0_6, %c0_7] : memref<32x128xbf16, #tpu.memory_space<vmem>>, vector<32x128xbf16>
    tpu.vector_store %arg4[%c0_6, %c0_7], %8 {strides = array<i32>} : memref<32x128xbf16, #tpu.memory_space<vmem>>, vector<32x128xbf16>,
    return
  }
  func.func @transform_0(%arg0: i32) -> (i32, i32) {
    %c0_i32 = arith.constant 0 : i32
    %c0_i32_0 = arith.constant 0 : i32
    return %arg0, %c0_i32 : i32, i32
  }
  func.func @transform_1(%arg0: i32) -> (i32, i32) {
    %c0_i32 = arith.constant 0 : i32
    %c0_i32_0 = arith.constant 0 : i32
    %c0_i32_1 = arith.constant 0 : i32
    return %c0_i32, %c0_i32_0 : i32, i32
  }
  func.func @transform_2(%arg0: i32) -> (i32, i32) {
    %c0_i32 = arith.constant 0 : i32
    %c0_i32_0 = arith.constant 0 : i32
    %c0_i32_1 = arith.constant 0 : i32
    return %c0_i32, %c0_i32_0 : i32, i32
  }
  func.func @transform_3(%arg0: i32) -> (i32, i32) {
    %c0_i32 = arith.constant 0 : i32
    %c0_i32_0 = arith.constant 0 : i32
    return %arg0, %c0_i32 : i32, i32
  }
}

module attributes {stable_mosaic.version = 11 : i64} {
  func.func @_gemm_bias_act_kernel(%arg0: i32, %arg1: memref<128x64xbf16, #tpu.memory_space<vmem>>, %arg2: memref<64x128xbf16, #tpu.memory_space<vmem>>, %arg3: memref<1x128xf32, #tpu.memory_space<vmem>>, %arg4: memref<128x128xf32, #tpu.memory_space<vmem>>) attributes {dimension_semantics = [#tpu.dimension_semantics<parallel>], iteration_bounds = array<i64: 1>, scalar_prefetch = 0 : i64, scratch_operands = 0 : i64, tpu.core_type = #tpu.core_type<tc>, window_params = [{transform_indices = @transform_0, window_bounds = array<i64: 128, 64>}, {pipeline_mode = #tpu.pipeline_mode<synchronous>, transform_indices = @transform_1, window_bounds = array<i64: 64, 128>}, {pipeline_mode = #tpu.pipeline_mode<synchronous>, transform_indices = @transform_2, window_bounds = array<i64: 1, 128>}, {transform_indices = @transform_3, window_bounds = array<i64: 128, 128>}]} {
    %c0 = arith.constant 0 : index
    %c0_0 = arith.constant 0 : index
    %0 = vector.load %arg1[%c0, %c0_0] : memref<128x64xbf16, #tpu.memory_space<vmem>>, vector<128x64xbf16>
    %c0_1 = arith.constant 0 : index
    %c0_2 = arith.constant 0 : index
    %1 = vector.load %arg2[%c0_1, %c0_2] : memref<64x128xbf16, #tpu.memory_space<vmem>>, vector<64x128xbf16>
    %cst = arith.constant dense<0.000000e+00> : vector<128x128xf32>
    %2 = tpu.matmul %0, %1, %cst {dimension_numbers = #tpu.dot_dimension_numbers<[1], [0], [0], [1], [0, 0, 1, 1], [], []>} : vector<128x64xbf16>, vector<64x128xbf16>, vector<128x128xf32> -> vector<128x128xf32>
    %c0_3 = arith.constant 0 : index
    %c0_4 = arith.constant 0 : index
    %3 = vector.load %arg3[%c0_3, %c0_4] : memref<1x128xf32, #tpu.memory_space<vmem>>, vector<1x128xf32>
    %4 = vector.broadcast %3 : vector<1x128xf32> to vector<128x128xf32>
    %5 = arith.addf %2, %4 : vector<128x128xf32>
    %cst_5 = arith.constant 0.000000e+00 : f32
    %6 = vector.broadcast %cst_5 : f32 to vector<128x128xf32>
    %7 = arith.subf %6, %5 : vector<128x128xf32>
    %8 = math.exp %7 : vector<128x128xf32>
    %cst_6 = arith.constant 1.000000e+00 : f32
    %9 = vector.broadcast %cst_6 : f32 to vector<128x128xf32>
    %10 = arith.addf %9, %8 : vector<128x128xf32>
    %11 = tpu.reciprocal %10 {approx = true} : vector<128x128xf32> -> vector<128x128xf32>
    %c0_7 = arith.constant 0 : index
    %c0_8 = arith.constant 0 : index
    %12 = vector.load %arg4[%c0_7, %c0_8] : memref<128x128xf32, #tpu.memory_space<vmem>>, vector<128x128xf32>
    tpu.vector_store %arg4[%c0_7, %c0_8], %11 {strides = array<i32>} : memref<128x128xf32, #tpu.memory_space<vmem>>, vector<128x128xf32>,
    return
  }
  func.func @transform_0(%arg0: i32) -> (i32, i32) {
    %c0_i32 = arith.constant 0 : i32
    %c0_i32_0 = arith.constant 0 : i32
    return %arg0, %c0_i32 : i32, i32
  }
  func.func @transform_1(%arg0: i32) -> (i32, i32) {
    %c0_i32 = arith.constant 0 : i32
    %c0_i32_0 = arith.constant 0 : i32
    %c0_i32_1 = arith.constant 0 : i32
    return %c0_i32, %c0_i32_0 : i32, i32
  }
  func.func @transform_2(%arg0: i32) -> (i32, i32) {
    %c0_i32 = arith.constant 0 : i32
    %c0_i32_0 = arith.constant 0 : i32
    %c0_i32_1 = arith.constant 0 : i32
    return %c0_i32, %c0_i32_0 : i32, i32
  }
  func.func @transform_3(%arg0: i32) -> (i32, i32) {
    %c0_i32 = arith.constant 0 : i32
    %c0_i32_0 = arith.constant 0 : i32
    return %arg0, %c0_i32 : i32, i32
  }
}

</mosaic_0001>

<bundles_post_ra>
// kernel: autoencoder_forward.6
= control target key start
LH: loop header
LB: loop body
LE: loop exit
PB: predicated region body
PF: predicated region fallthrough
CT: control target
= control target key end

     0   :  { %vm118_vm0 = vcmask 1044480   ;;  %vm119_vm1 = vcmask 1045504   ;;  %vm93_vm2 = vcmask 220160   ;;  %v465_v1 = vmov 65535   ;;  %s551_s1 = inlined_call_operand.vmem [shape: bf16[27,128], index: 1, kind: input, shape index: {}]   ;;  %s552_s0 = inlined_call_operand.vmem [shape: bf16[128,27], index: 0, kind: input, shape index: {}]   ;;  %s553_s2 = inlined_call_operand.vmem [shape: f32[1,128], index: 2, kind: input, shape index: {}]   ;;  %s554_s3 = inlined_call_operand.vmem [shape: bf16[128,128], index: 3, kind: output, shape index: {}]  }
   0x1   :  { %v455_v0 = vld [vmem:[%s551_s1] sm:$0xff]   ;;  %v120_v2 = vsel %vm118_vm0, 4294967295, %v465_v1  ;;  %v456_v3 = vld [vmem:[%s551_s1 + $0x8] sm:$0x3f]   ;;  %v461_v10 = vld [vmem:[%s552_s0 + $0x10] sm:$0xff]  }
   0x2   :  { %430 = vmatprep.subr.bf16.mxu0 %v455_v0  ;;  %450 = vmatprep.subr.bf16.mxu1 %v455_v0  ;;  %v121_v4 = vsel %vm119_vm1, %v120_v2, 0  ;;  %v457_v5 = vld [vmem:[%s552_s0] sm:$0xff]   ;;  %v459_v8 = vld [vmem:[%s552_s0 + $0x8] sm:$0xff]   ;;  %v462_v11 = vld [vmem:[%s552_s0 + $0x30] sm:$0xff]  }
   0x3   :  { %431 = vmatpush3.bf16.msra.mxu0 %v455_v0  ;;  %452 = vmatpush3.bf16.msra.mxu1 %v455_v0  ;;  %v123_v6 = vand.u32 %v456_v3, %v121_v4  ;;  %v458_v7 = vld [vmem:[%s552_s0 + $0x20] sm:$0xff]   ;;  %v460_v9 = vld [vmem:[%s552_s0 + $0x28] sm:$0xff]   ;;  %v463_v12 = vld [vmem:[%s552_s0 + $0x18] sm:$0xff]  }
   0x4   :  { %434 = vmatprep.mubr.msk.bf16.mxu0 %vm93_vm2, %v457_v5  ;;  %442 = vmatprep.mubr.msk.bf16.mxu1 %vm93_vm2, %v458_v7  ;;  %v464_v13 = vld [vmem:[%s552_s0 + $0x38] sm:$0xff]   ;;  %v322_v14 = vld [vmem:[%s553_s2] ss:$0 sm:$0xff] }
   0x5   :  { %432 = vmatprep.subr.bf16.mxu0 %v123_v6  ;;  %451 = vmatprep.subr.bf16.mxu1 %v123_v6 }
   0x7   :  { %433 = vmatpush3.bf16.msra.mxu0 %v123_v6  ;;  %453 = vmatpush3.bf16.msra.mxu1 %v123_v6 }
   0xa   :  { %435 = vmatmul.mubr.msk.bf16.vlgmr.msra.gmra.mrb[0].mxu0 %vm93_vm2, %v459_v8  ;;  %443 = vmatmul.mubr.msk.bf16.vlgmr.msra.gmra.mrb[0].mxu1 %vm93_vm2, %v460_v9 }
   0xb   :  { %438 = vmatprep.mubr.msk.bf16.mxu0 %vm93_vm2, %v461_v10  ;;  %446 = vmatprep.mubr.msk.bf16.mxu1 %vm93_vm2, %v462_v11 }
  0x12   :  { %439 = vmatmul.mubr.msk.bf16.gmra.mrb[4].mxu0 %vm93_vm2, %v463_v12  ;;  %447 = vmatmul.mubr.msk.bf16.gmra.mrb[4].mxu1 %vm93_vm2, %v464_v13 }
  0xdd   :  { %v436_v15 = vpop.f32.mrb[0].mxu0  ;;  %v444_v16 = vpop.f32.mrb[0].mxu1 }
  0xde   :  { %v168_v17 = vadd.f32 %v436_v15, %v322_v14  ;;  %v200_v18 = vadd.f32 %v444_v16, %v322_v14  ;;  %v159_v19 = vpop.f32.mrb[1].mxu0  ;;  %v191_v20 = vpop.f32.mrb[1].mxu1 }
  0xdf   :  { %v160_v21 = vadd.f32 %v322_v14, %v159_v19  ;;  %v192_v22 = vadd.f32 %v322_v14, %v191_v20  ;;  %v437_v23 = vpop.f32.mrb[2].mxu0  ;;  %v445_v24 = vpop.f32.mrb[2].mxu1 }
  0xe0   :  { %v171_v25 = vadd.f32 %v437_v23, %v322_v14  ;;  %v203_v26 = vadd.f32 %v445_v24, %v322_v14  ;;  %v162_v27 = vpop.f32.mrb[3].mxu0  ;;  %v194_v28 = vpop.f32.mrb[3].mxu1  ;;  %v224_v31 = vmax.f32 %v168_v17, 0.0  ;;  %v232_v32 = vmax.f32 %v200_v18, 0.0 }
  0xe1   :  { %v163_v29 = vadd.f32 %v322_v14, %v162_v27  ;;  %v195_v30 = vadd.f32 %v322_v14, %v194_v28  ;;  %v222_v35 = vmax.f32 %v160_v21, 0.0  ;;  %v230_v36 = vmax.f32 %v192_v22, 0.0 }
  0xe2   :  { %v225_v33 = vmax.f32 %v171_v25, 0.0  ;;  %v233_v34 = vmax.f32 %v203_v26, 0.0 }
  0xe3   :  { %v223_v37 = vmax.f32 %v163_v29, 0.0  ;;  %v231_v38 = vmax.f32 %v195_v30, 0.0 }
  0xe4   :  { %v381_v39 = vpack.c.bf16 %v225_v33, %v224_v31  ;;  %v401_v40 = vpack.c.bf16 %v233_v34, %v232_v32 }
  0xe5   :  { %v376_v41 = vpack.c.bf16 %v223_v37, %v222_v35  ;;  %v396_v42 = vpack.c.bf16 %v231_v38, %v230_v36  ;;  %v440_v43 = vpop.f32.mrb[4].mxu0  ;;  %v448_v44 = vpop.f32.mrb[4].mxu1 }
  0xe6   :  { %413 = vst [vmem:[%s554_s3 + $0x8] sm:$0xff] %v381_v39   ;;  %417 = vst [vmem:[%s554_s3 + $0x28] sm:$0xff] %v401_v40   ;;  %v184_v45 = vadd.f32 %v440_v43, %v322_v14  ;;  %v216_v46 = vadd.f32 %v448_v44, %v322_v14  ;;  %v175_v47 = vpop.f32.mrb[5].mxu0  ;;  %v207_v48 = vpop.f32.mrb[5].mxu1 }
  0xe7   :  { %377 = vst [vmem:[%s554_s3] sm:$0xff] %v376_v41   ;;  %416 = vst [vmem:[%s554_s3 + $0x20] sm:$0xff] %v396_v42   ;;  %v176_v49 = vadd.f32 %v322_v14, %v175_v47  ;;  %v208_v50 = vadd.f32 %v322_v14, %v207_v48  ;;  %v441_v51 = vpop.f32.mrb[6].mxu0  ;;  %v449_v52 = vpop.f32.mrb[6].mxu1 }
  0xe8   :  { %v187_v53 = vadd.f32 %v441_v51, %v322_v14  ;;  %v219_v54 = vadd.f32 %v449_v52, %v322_v14  ;;  %v178_v55 = vpop.f32.mrb[7].mxu0  ;;  %v210_v56 = vpop.f32.mrb[7].mxu1  ;;  %v228_v59 = vmax.f32 %v184_v45, 0.0  ;;  %v236_v60 = vmax.f32 %v216_v46, 0.0 }
  0xe9   :  { %v179_v57 = vadd.f32 %v322_v14, %v178_v55  ;;  %v211_v58 = vadd.f32 %v322_v14, %v210_v56  ;;  %v226_v63 = vmax.f32 %v176_v49, 0.0  ;;  %v234_v0 = vmax.f32 %v208_v50, 0.0 }
  0xea   :  { %v229_v61 = vmax.f32 %v187_v53, 0.0  ;;  %v237_v62 = vmax.f32 %v219_v54, 0.0 }
  0xeb   :  { %v227_v1 = vmax.f32 %v179_v57, 0.0  ;;  %v235_v2 = vmax.f32 %v211_v58, 0.0 }
  0xec   :  { %v391_v3 = vpack.c.bf16 %v229_v61, %v228_v59  ;;  %v411_v4 = vpack.c.bf16 %v237_v62, %v236_v60 }
  0xed   :  { %v386_v5 = vpack.c.bf16 %v227_v1, %v226_v63  ;;  %v406_v6 = vpack.c.bf16 %v235_v2, %v234_v0 }
  0xee   :  { %415 = vst [vmem:[%s554_s3 + $0x18] sm:$0xff] %v391_v3   ;;  %419 = vst [vmem:[%s554_s3 + $0x38] sm:$0xff] %v411_v4  }
  0xef   :  { %414 = vst [vmem:[%s554_s3 + $0x10] sm:$0xff] %v386_v5   ;;  %418 = vst [vmem:[%s554_s3 + $0x30] sm:$0xff] %v406_v6  }

// kernel: autoencoder_forward.7
= control target key start
LH: loop header
LB: loop body
LE: loop exit
PB: predicated region body
PF: predicated region fallthrough
CT: control target
= control target key end

     0   :  { %v269_v0 = vmov 0   ;;  %vm116_vm0 = vcmask 130048   ;;  %s338_s1 = inlined_call_operand.vmem [shape: bf16[144,128], index: 1, kind: input, shape index: {}]   ;;  %s339_s0 = inlined_call_operand.vmem [shape: bf16[32,144], index: 0, kind: input, shape index: {}]   ;;  %s340_s2 = inlined_call_operand.vmem [shape: f32[1,128], index: 2, kind: input, shape index: {}]   ;;  %s341_s3 = inlined_call_operand.vmem [shape: bf16[32,128], index: 3, kind: output, shape index: {}]  }
   0x1   :  { %123 = vmatprep.subr.bf16.mxu0 %v269_v0  ;;  %235 = vmatprep.subr.bf16.mxu1 %v269_v0  ;;  %v254_v1 = vld [vmem:[%s338_s1] sm:$0xff]   ;;  %v255_v2 = vld [vmem:[%s338_s1 + $0x8] sm:$0xff]   ;;  %v256_v3 = vld [vmem:[%s338_s1 + $0x10] sm:$0xff]  }
   0x2   :  { %124 = vmatpush1.bf16.msra.mxu0 %v254_v1  ;;  %244 = vmatpush1.bf16.msra.mxu1 %v254_v1  ;;  %v257_v4 = vld [vmem:[%s338_s1 + $0x18] sm:$0xff]   ;;  %v265_v5 = vld [vmem:[%s339_s0 + $0x4] ss:$8 sps:$4 sm:$0xff]   ;;  %v260_v9 = vld [vmem:[%s338_s1 + $0x30] sm:$0xff]  }
   0x3   :  { %125 = vmatprep.subr.bf16.mxu0 %v269_v0  ;;  %236 = vmatprep.subr.bf16.mxu1 %v269_v0  ;;  %v268_v6 = vld [vmem:[%s339_s0 + $0x14] ss:$8 sps:$4 sm:$0xff]   ;;  %v258_v7 = vld [vmem:[%s338_s1 + $0x20] sm:$0xff]   ;;  %v259_v8 = vld [vmem:[%s338_s1 + $0x28] sm:$0xff]  }
   0x4   :  { %214 = vmatprep.mubr.msk.bf16.mxu0 %vm116_vm0, %v265_v5  ;;  %215 = vmatprep.mubr.msk.bf16.mxu1 %vm116_vm0, %v268_v6  ;;  %v261_v10 = vld [vmem:[%s338_s1 + $0x38] sm:$0xff]   ;;  %v262_v11 = vld [vmem:[%s338_s1 + $0x40] sm:$0xff]  }
   0x5   :  { %v263_v12 = vld [vmem:[%s339_s0] ss:$8 sps:$4 sm:$0xff]   ;;  %v266_v13 = vld [vmem:[%s339_s0 + $0x10] ss:$8 sps:$4 sm:$0xff]  }
   0x6   :  { %126 = vmatpush1.bf16.msra.mxu0 %v255_v2  ;;  %245 = vmatpush1.bf16.msra.mxu1 %v255_v2  ;;  %v200_v14 = vld [vmem:[%s340_s2] ss:$0 sm:$0xff] }
   0x7   :  { %127 = vmatprep.subr.bf16.mxu0 %v269_v0  ;;  %237 = vmatprep.subr.bf16.mxu1 %v269_v0 }
   0xa   :  { %128 = vmatpush1.bf16.msra.mxu0 %v256_v3  ;;  %246 = vmatpush1.bf16.msra.mxu1 %v256_v3 }
   0xb   :  { %129 = vmatprep.subr.bf16.mxu0 %v269_v0  ;;  %238 = vmatprep.subr.bf16.mxu1 %v269_v0 }
   0xe   :  { %130 = vmatpush1.bf16.msra.mxu0 %v257_v4  ;;  %247 = vmatpush1.bf16.msra.mxu1 %v257_v4 }
   0xf   :  { %131 = vmatprep.subr.bf16.mxu0 %v269_v0  ;;  %239 = vmatprep.subr.bf16.mxu1 %v269_v0 }
  0x12   :  { %132 = vmatpush1.bf16.msra.mxu0 %v258_v7  ;;  %248 = vmatpush1.bf16.msra.mxu1 %v258_v7 }
  0x13   :  { %133 = vmatprep.subr.bf16.mxu0 %v269_v0  ;;  %240 = vmatprep.subr.bf16.mxu1 %v269_v0 }
  0x16   :  { %134 = vmatpush1.bf16.msra.mxu0 %v259_v8  ;;  %249 = vmatpush1.bf16.msra.mxu1 %v259_v8 }
  0x17   :  { %135 = vmatprep.subr.bf16.mxu0 %v269_v0  ;;  %241 = vmatprep.subr.bf16.mxu1 %v269_v0 }
  0x1a   :  { %136 = vmatpush1.bf16.msra.mxu0 %v260_v9  ;;  %250 = vmatpush1.bf16.msra.mxu1 %v260_v9 }
  0x1b   :  { %137 = vmatprep.subr.bf16.mxu0 %v269_v0  ;;  %242 = vmatprep.subr.bf16.mxu1 %v269_v0 }
  0x1e   :  { %138 = vmatpush1.bf16.msra.mxu0 %v261_v10  ;;  %251 = vmatpush1.bf16.msra.mxu1 %v261_v10 }
  0x1f   :  { %139 = vmatprep.subr.bf16.mxu0 %v269_v0  ;;  %243 = vmatprep.subr.bf16.mxu1 %v269_v0 }
  0x22   :  { %140 = vmatpush1.bf16.msra.mxu0 %v262_v11  ;;  %252 = vmatpush1.bf16.msra.mxu1 %v262_v11 }
  0x25   :  { %156 = vmatmul.mubr.bf16.vlgmr.msra.gmra.mrb[0].mxu0 %v263_v12  ;;  %164 = vmatmul.mubr.bf16.vlgmr.msra.gmra.mrb[0].mxu1 %v266_v13 }
  0xf8   :  { %v157_v15 = vpop.f32.mrb[0].mxu0  ;;  %v165_v16 = vpop.f32.mrb[0].mxu1 }
  0xf9   :  { %v158_v17 = vadd.f32 %v200_v14, %v157_v15  ;;  %v166_v18 = vadd.f32 %v200_v14, %v165_v16  ;;  %v159_v19 = vpop.f32.mrb[1].mxu0  ;;  %v167_v20 = vpop.f32.mrb[1].mxu1 }
  0xfa   :  { %v160_v21 = vpop.f32.mrb[2].mxu0  ;;  %v168_v22 = vpop.f32.mrb[2].mxu1 }
  0xfb   :  { %v161_v23 = vadd.f32 %v200_v14, %v160_v21  ;;  %v169_v24 = vadd.f32 %v200_v14, %v168_v22  ;;  %v162_v25 = vpop.f32.mrb[3].mxu0  ;;  %v170_v26 = vpop.f32.mrb[3].mxu1  ;;  %v172_v27 = vmax.f32 %v158_v17, 0.0  ;;  %v174_v28 = vmax.f32 %v166_v18, 0.0 }
  0xfd   :  { %v173_v29 = vmax.f32 %v161_v23, 0.0  ;;  %v175_v30 = vmax.f32 %v169_v24, 0.0 }
  0xff   :  { %v227_v31 = vpack.c.bf16 %v173_v29, %v172_v27  ;;  %v232_v32 = vpack.c.bf16 %v175_v30, %v174_v28 }
 0x101   :  { %228 = vst [vmem:[%s341_s3] sm:$0xff] %v227_v31   ;;  %234 = vst [vmem:[%s341_s3 + $0x8] sm:$0xff] %v232_v32  }

// kernel: autoencoder_forward.8
= control target key start
LH: loop header
LB: loop body
LE: loop exit
PB: predicated region body
PF: predicated region fallthrough
CT: control target
= control target key end

     0   :  { %v376_v1 = vmov 0.0   ;;  %vm377_vm0 = vmmov 0   ;;  %vm185_vm1 = vcmask 261120   ;;  %s467_s1 = inlined_call_operand.vmem [shape: bf16[288,128], index: 1, kind: input, shape index: {}]   ;;  %s468_s0 = inlined_call_operand.vmem [shape: bf16[16,288], index: 0, kind: input, shape index: {}]   ;;  %s469_s2 = inlined_call_operand.vmem [shape: f32[1,128], index: 2, kind: input, shape index: {}]   ;;  %s470_s3 = inlined_call_operand.vmem [shape: bf16[16,128], index: 3, kind: output, shape index: {}]  }
   0x1   :  { %v354_v0 = vld [vmem:[%s467_s1 + $0x40] sm:$0xff]   ;;  %344 = vmatprep.subr.bf16.mxu1 %v376_v1  ;;  %348 = vmatprep.mubr.msk.bf16.mxu1 %vm377_vm0, %v376_v1  ;;  %v356_v3 = vld [vmem:[%s467_s1 + $0x48] sm:$0xff]   ;;  %v358_v5 = vld [vmem:[%s467_s1 + $0x50] sm:$0xff]  }
   0x2   :  { %v355_v2 = vld [vmem:[%s467_s1] sm:$0xff]   ;;  %319 = vmatprep.subr.bf16.mxu0 %v354_v0  ;;  %v357_v4 = vld [vmem:[%s467_s1 + $0x8] sm:$0xff]   ;;  %v359_v6 = vld [vmem:[%s467_s1 + $0x10] sm:$0xff]  }
   0x3   :  { %320 = vmatpush3.bf16.msra.mxu0 %v355_v2  ;;  %v360_v7 = vld [vmem:[%s467_s1 + $0x58] sm:$0xff]   ;;  %v362_v9 = vld [vmem:[%s467_s1 + $0x60] sm:$0xff]   ;;  %v364_v12 = vld [vmem:[%s467_s1 + $0x68] sm:$0xff]  }
   0x4   :  { %321 = vmatprep.subr.bf16.mxu0 %v356_v3  ;;  %v361_v8 = vld [vmem:[%s467_s1 + $0x18] sm:$0xff]   ;;  %v368_v10 = vld [vmem:[%s467_s1 + $0x80] sm:$0xff]   ;;  %v365_v13 = vld [vmem:[%s467_s1 + $0x28] sm:$0xff]  }
   0x5   :  { %v363_v11 = vld [vmem:[%s467_s1 + $0x20] sm:$0xff]   ;;  %345 = vmatpush3.bf16.msra.mxu1 %v368_v10  ;;  %v374_v15 = vld [vmem:[%s467_s1 + $0x88] sm:$0xff]   ;;  %v366_v16 = vld [vmem:[%s467_s1 + $0x70] sm:$0xff]  }
   0x6   :  { %346 = vmatprep.subr.bf16.mxu1 %v376_v1  ;;  %v373_v14 = vld [vmem:[%s468_s0 + $0x4] ss:$12 sps:$4 sm:$0xff]   ;;  %v375_v17 = vld [vmem:[%s468_s0 + $0x8] ss:$12 sps:$4 sm:$0xff]   ;;  %v369_v19 = vld [vmem:[%s467_s1 + $0x78] sm:$0xff]  }
   0x7   :  { %322 = vmatpush3.bf16.msra.mxu0 %v357_v4  ;;  %221 = vmatprep.mubr.bf16.mxu0 %v373_v14  ;;  %v367_v18 = vld [vmem:[%s467_s1 + $0x30] sm:$0xff]   ;;  %v370_v20 = vld [vmem:[%s467_s1 + $0x38] sm:$0xff]   ;;  %v371_v21 = vld [vmem:[%s468_s0] ss:$12 sps:$4 sm:$0xff]  }
   0x8   :  { %323 = vmatprep.subr.bf16.mxu0 %v358_v5  ;;  %v287_v28 = vld [vmem:[%s469_s2] ss:$0 sm:$0xff] }
   0x9   :  { %347 = vmatpush3.bf16.msra.mxu1 %v374_v15 }
   0xb   :  { %324 = vmatpush3.bf16.msra.mxu0 %v359_v6 }
   0xc   :  { %325 = vmatprep.subr.bf16.mxu0 %v360_v7  ;;  %349 = vmatmul.mubr.msk.bf16.vlgmr.msra.gmra.mrb[0].mxu1 %vm185_vm1, %v375_v17 }
   0xf   :  { %326 = vmatpush3.bf16.msra.mxu0 %v361_v8 }
  0x10   :  { %327 = vmatprep.subr.bf16.mxu0 %v362_v9 }
  0x13   :  { %328 = vmatpush3.bf16.msra.mxu0 %v363_v11 }
  0x14   :  { %329 = vmatprep.subr.bf16.mxu0 %v364_v12 }
  0x17   :  { %330 = vmatpush3.bf16.msra.mxu0 %v365_v13 }
  0x18   :  { %331 = vmatprep.subr.bf16.mxu0 %v366_v16 }
  0x1b   :  { %332 = vmatpush3.bf16.msra.mxu0 %v367_v18 }
  0x1c   :  { %333 = vmatprep.subr.bf16.mxu0 %v369_v19 }
  0x1f   :  { %334 = vmatpush3.bf16.msra.mxu0 %v370_v20 }
  0x22   :  { %222 = vmatmul.mubr.bf16.vlgmr.msra.gmra.mrb[0].mxu0 %v371_v21 }
  0xdf   :  { %v264_v22 = vpop.f32.mrb[0].mxu1 }
  0xe0   :  { %v350_v23 = vpop.f32.mrb[1].mxu1 }
  0xe1   :  { %v267_v24 = vpop.f32.mrb[2].mxu1 }
  0xe2   :  { %v351_v25 = vpop.f32.mrb[3].mxu1 }
  0xf5   :  { %v335_v26 = vpop.f32.mrb[0].mxu0 }
  0xf6   :  { %v336_v27 = vpop.f32.mrb[1].mxu0 }
  0xf7   :  { %v337_v29 = vadd.f32 %v336_v27, %v335_v26  ;;  %v338_v30 = vpop.f32.mrb[2].mxu0 }
  0xf8   :  { %v339_v31 = vpop.f32.mrb[3].mxu0 }
  0xf9   :  { %v224_v32 = vadd.f32 %v337_v29, %v287_v28  ;;  %v340_v33 = vadd.f32 %v339_v31, %v338_v30 }
  0xfb   :  { %v265_v34 = vadd.f32 %v264_v22, %v224_v32  ;;  %v227_v35 = vadd.f32 %v340_v33, %v287_v28 }
  0xfd   :  { %v268_v36 = vadd.f32 %v267_v24, %v227_v35  ;;  %v271_v37 = vmax.f32 %v265_v34, 0.0 }
  0xff   :  { %v272_v38 = vmax.f32 %v268_v36, 0.0 }
 0x101   :  { %v317_v39 = vpack.c.bf16 %v272_v38, %v271_v37 }
 0x103   :  { %318 = vst [vmem:[%s470_s3] sm:$0xff] %v317_v39  }

// kernel: autoencoder_forward.10
= control target key start
LH: loop header
LB: loop body
LE: loop exit
PB: predicated region body
PF: predicated region fallthrough
CT: control target
= control target key end

     0   :  { %s308_s1 = inlined_call_operand.vmem [shape: bf16[128,128], index: 1, kind: input, shape index: {}]   ;;  %s309_s0 = inlined_call_operand.vmem [shape: bf16[32,128], index: 0, kind: input, shape index: {}]   ;;  %s310_s2 = inlined_call_operand.vmem [shape: f32[1,128], index: 2, kind: input, shape index: {}]   ;;  %s311_s3 = inlined_call_operand.vmem [shape: bf16[32,128], index: 3, kind: output, shape index: {}]  }
   0x1   :  { %v239_v0 = vld [vmem:[%s308_s1] sm:$0xff]   ;;  %v240_v1 = vld [vmem:[%s308_s1 + $0x8] sm:$0xff]   ;;  %v241_v2 = vld [vmem:[%s308_s1 + $0x10] sm:$0xff]  }
   0x2   :  { %219 = vmatprep.subr.bf16.mxu0 %v239_v0  ;;  %v242_v3 = vld [vmem:[%s308_s1 + $0x18] sm:$0xff]   ;;  %v247_v4 = vld [vmem:[%s309_s0] sm:$0xff]   ;;  %v244_v6 = vld [vmem:[%s308_s1 + $0x28] sm:$0xff]  }
   0x3   :  { %220 = vmatpush3.bf16.msra.mxu0 %v239_v0  ;;  %235 = vmatprep.mubr.bf16.mxu0 %v247_v4  ;;  %v243_v5 = vld [vmem:[%s308_s1 + $0x20] sm:$0xff]   ;;  %v245_v7 = vld [vmem:[%s308_s1 + $0x30] sm:$0xff]   ;;  %v246_v8 = vld [vmem:[%s308_s1 + $0x38] sm:$0xff]  }
   0x4   :  { %221 = vmatprep.subr.bf16.mxu0 %v240_v1  ;;  %v248_v9 = vld [vmem:[%s309_s0 + $0x8] sm:$0xff]   ;;  %v179_v10 = vld [vmem:[%s310_s2] ss:$0 sm:$0xff] }
   0x7   :  { %222 = vmatpush3.bf16.msra.mxu0 %v240_v1 }
   0x8   :  { %223 = vmatprep.subr.bf16.mxu0 %v241_v2 }
   0xb   :  { %224 = vmatpush3.bf16.msra.mxu0 %v241_v2 }
   0xc   :  { %225 = vmatprep.subr.bf16.mxu0 %v242_v3 }
   0xf   :  { %226 = vmatpush3.bf16.msra.mxu0 %v242_v3 }
  0x10   :  { %227 = vmatprep.subr.bf16.mxu0 %v243_v5 }
  0x13   :  { %228 = vmatpush3.bf16.msra.mxu0 %v243_v5 }
  0x14   :  { %229 = vmatprep.subr.bf16.mxu0 %v244_v6 }
  0x17   :  { %230 = vmatpush3.bf16.msra.mxu0 %v244_v6 }
  0x18   :  { %231 = vmatprep.subr.bf16.mxu0 %v245_v7 }
  0x1b   :  { %232 = vmatpush3.bf16.msra.mxu0 %v245_v7 }
  0x1c   :  { %233 = vmatprep.subr.bf16.mxu0 %v246_v8 }
  0x1f   :  { %234 = vmatpush3.bf16.msra.mxu0 %v246_v8 }
  0x22   :  { %236 = vmatmul.mubr.bf16.vlgmr.msra.gmra.mrb[0].mxu0 %v248_v9 }
  0xf5   :  { %v237_v11 = vpop.f32.mrb[0].mxu0 }
  0xf6   :  { %v145_v12 = vadd.f32 %v237_v11, %v179_v10  ;;  %v136_v13 = vpop.f32.mrb[1].mxu0 }
  0xf7   :  { %v137_v14 = vadd.f32 %v179_v10, %v136_v13  ;;  %v238_v15 = vpop.f32.mrb[2].mxu0 }
  0xf8   :  { %v148_v16 = vadd.f32 %v238_v15, %v179_v10  ;;  %v139_v17 = vpop.f32.mrb[3].mxu0  ;;  %v153_v19 = vmax.f32 %v145_v12, 0.0 }
  0xf9   :  { %v140_v18 = vadd.f32 %v179_v10, %v139_v17  ;;  %v151_v21 = vmax.f32 %v137_v14, 0.0 }
  0xfa   :  { %v154_v20 = vmax.f32 %v148_v16, 0.0 }
  0xfb   :  { %v152_v22 = vmax.f32 %v140_v18, 0.0 }
  0xfc   :  { %v206_v23 = vpack.c.bf16 %v154_v20, %v153_v19 }
  0xfd   :  { %v201_v24 = vpack.c.bf16 %v152_v22, %v151_v21 }
  0xfe   :  { %208 = vst [vmem:[%s311_s3 + $0x8] sm:$0xff] %v206_v23  }
  0xff   :  { %202 = vst [vmem:[%s311_s3] sm:$0xff] %v201_v24  }

// kernel: autoencoder_forward.9
= control target key start
LH: loop header
LB: loop body
LE: loop exit
PB: predicated region body
PF: predicated region fallthrough
CT: control target
= control target key end

     0   :  { %s368_s1 = inlined_call_operand.vmem [shape: bf16[256,128], index: 1, kind: input, shape index: {}]   ;;  %s369_s0 = inlined_call_operand.vmem [shape: bf16[16,256], index: 0, kind: input, shape index: {}]   ;;  %s370_s2 = inlined_call_operand.vmem [shape: f32[1,128], index: 2, kind: input, shape index: {}]   ;;  %s371_s3 = inlined_call_operand.vmem [shape: bf16[16,128], index: 3, kind: output, shape index: {}]  }
   0x1   :  { %v269_v0 = vld [vmem:[%s368_s1 + $0x40] sm:$0xff]   ;;  %v271_v2 = vld [vmem:[%s368_s1 + $0x48] sm:$0xff]   ;;  %v273_v4 = vld [vmem:[%s368_s1 + $0x50] sm:$0xff]  }
   0x2   :  { %v270_v1 = vld [vmem:[%s368_s1] sm:$0xff]   ;;  %247 = vmatprep.subr.bf16.mxu0 %v269_v0  ;;  %v272_v3 = vld [vmem:[%s368_s1 + $0x8] sm:$0xff]   ;;  %v274_v5 = vld [vmem:[%s368_s1 + $0x10] sm:$0xff]  }
   0x3   :  { %248 = vmatpush3.bf16.msra.mxu0 %v270_v1  ;;  %v275_v6 = vld [vmem:[%s368_s1 + $0x58] sm:$0xff]   ;;  %v277_v8 = vld [vmem:[%s368_s1 + $0x60] sm:$0xff]   ;;  %v279_v10 = vld [vmem:[%s368_s1 + $0x68] sm:$0xff]  }
   0x4   :  { %249 = vmatprep.subr.bf16.mxu0 %v271_v2  ;;  %v276_v7 = vld [vmem:[%s368_s1 + $0x18] sm:$0xff]   ;;  %v278_v9 = vld [vmem:[%s368_s1 + $0x20] sm:$0xff]   ;;  %v280_v12 = vld [vmem:[%s368_s1 + $0x28] sm:$0xff]  }
   0x5   :  { %v287_v11 = vld [vmem:[%s369_s0 + $0x4] ss:$8 sps:$4 sm:$0xff]   ;;  %v281_v13 = vld [vmem:[%s368_s1 + $0x70] sm:$0xff]   ;;  %v283_v15 = vld [vmem:[%s368_s1 + $0x78] sm:$0xff]  }
   0x6   :  { %194 = vmatprep.mubr.bf16.mxu0 %v287_v11  ;;  %v282_v14 = vld [vmem:[%s368_s1 + $0x30] sm:$0xff]   ;;  %v284_v16 = vld [vmem:[%s368_s1 + $0x38] sm:$0xff]   ;;  %v285_v17 = vld [vmem:[%s369_s0] ss:$8 sps:$4 sm:$0xff]  }
   0x7   :  { %250 = vmatpush3.bf16.msra.mxu0 %v272_v3  ;;  %v219_v19 = vld [vmem:[%s370_s2] ss:$0 sm:$0xff] }
   0x8   :  { %251 = vmatprep.subr.bf16.mxu0 %v273_v4 }
   0xb   :  { %252 = vmatpush3.bf16.msra.mxu0 %v274_v5 }
   0xc   :  { %253 = vmatprep.subr.bf16.mxu0 %v275_v6 }
   0xf   :  { %254 = vmatpush3.bf16.msra.mxu0 %v276_v7 }
  0x10   :  { %255 = vmatprep.subr.bf16.mxu0 %v277_v8 }
  0x13   :  { %256 = vmatpush3.bf16.msra.mxu0 %v278_v9 }
  0x14   :  { %257 = vmatprep.subr.bf16.mxu0 %v279_v10 }
  0x17   :  { %258 = vmatpush3.bf16.msra.mxu0 %v280_v12 }
  0x18   :  { %259 = vmatprep.subr.bf16.mxu0 %v281_v13 }
  0x1b   :  { %260 = vmatpush3.bf16.msra.mxu0 %v282_v14 }
  0x1c   :  { %261 = vmatprep.subr.bf16.mxu0 %v283_v15 }
  0x1f   :  { %262 = vmatpush3.bf16.msra.mxu0 %v284_v16 }
  0x22   :  { %195 = vmatmul.mubr.bf16.vlgmr.msra.gmra.mrb[0].mxu0 %v285_v17 }
  0xf5   :  { %v263_v18 = vpop.f32.mrb[0].mxu0 }
  0xf6   :  { %v264_v20 = vpop.f32.mrb[1].mxu0 }
  0xf7   :  { %v265_v21 = vadd.f32 %v264_v20, %v263_v18  ;;  %v266_v22 = vpop.f32.mrb[2].mxu0 }
  0xf8   :  { %v267_v23 = vpop.f32.mrb[3].mxu0 }
  0xf9   :  { %v197_v24 = vadd.f32 %v265_v21, %v219_v19  ;;  %v268_v25 = vadd.f32 %v267_v23, %v266_v22 }
  0xfb   :  { %v200_v26 = vadd.f32 %v268_v25, %v219_v19  ;;  %v203_v27 = vmax.f32 %v197_v24, 0.0 }
  0xfd   :  { %v204_v28 = vmax.f32 %v200_v26, 0.0 }
  0xff   :  { %v245_v29 = vpack.c.bf16 %v204_v28, %v203_v27 }
 0x101   :  { %246 = vst [vmem:[%s371_s3] sm:$0xff] %v245_v29  }

// kernel: autoencoder_forward.11
= control target key start
LH: loop header
LB: loop body
LE: loop exit
PB: predicated region body
PF: predicated region fallthrough
CT: control target
= control target key end

     0   :  { %vm110_vm0 = vcmask 523264   ;;  %s606_s1 = inlined_call_operand.vmem [shape: bf16[64,128], index: 1, kind: input, shape index: {}]   ;;  %s607_s0 = inlined_call_operand.vmem [shape: bf16[128,64], index: 0, kind: input, shape index: {}]   ;;  %s608_s2 = inlined_call_operand.vmem [shape: f32[1,128], index: 2, kind: input, shape index: {}]   ;;  %s609_s3 = inlined_call_operand.vmem [shape: f32[128,128], index: 3, kind: output, shape index: {}]  }
   0x1   :  { %v397_v0 = vld [vmem:[%s606_s1] sm:$0xff]   ;;  %v398_v1 = vld [vmem:[%s606_s1 + $0x8] sm:$0xff]   ;;  %v399_v2 = vld [vmem:[%s606_s1 + $0x10] sm:$0xff]  }
   0x2   :  { %365 = vmatprep.subr.bf16.mxu0 %v397_v0  ;;  %389 = vmatprep.subr.bf16.mxu1 %v397_v0  ;;  %v401_v3 = vld [vmem:[%s607_s0] sm:$0xff]   ;;  %v400_v5 = vld [vmem:[%s606_s1 + $0x18] sm:$0xff]   ;;  %v403_v6 = vld [vmem:[%s607_s0 + $0x8] sm:$0xff]  }
   0x3   :  { %366 = vmatpush3.bf16.msra.mxu0 %v397_v0  ;;  %393 = vmatpush3.bf16.msra.mxu1 %v397_v0  ;;  %v402_v4 = vld [vmem:[%s607_s0 + $0x20] sm:$0xff]   ;;  %v404_v7 = vld [vmem:[%s607_s0 + $0x28] sm:$0xff]   ;;  %v405_v8 = vld [vmem:[%s607_s0 + $0x10] sm:$0xff]  }
   0x4   :  { %367 = vmatprep.subr.bf16.mxu0 %v398_v1  ;;  %390 = vmatprep.subr.bf16.mxu1 %v398_v1  ;;  %v406_v9 = vld [vmem:[%s607_s0 + $0x30] sm:$0xff]   ;;  %v407_v10 = vld [vmem:[%s607_s0 + $0x18] sm:$0xff]   ;;  %v540_v12 = vld [vmem:[%s608_s2] ss:$0 sm:$0xff] }
   0x5   :  { %373 = vmatprep.mubr.msk.bf16.mxu0 %vm110_vm0, %v401_v3  ;;  %381 = vmatprep.mubr.msk.bf16.mxu1 %vm110_vm0, %v402_v4  ;;  %v408_v11 = vld [vmem:[%s607_s0 + $0x38] sm:$0xff]  }
   0x7   :  { %368 = vmatpush3.bf16.msra.mxu0 %v398_v1  ;;  %394 = vmatpush3.bf16.msra.mxu1 %v398_v1 }
   0x8   :  { %369 = vmatprep.subr.bf16.mxu0 %v399_v2  ;;  %391 = vmatprep.subr.bf16.mxu1 %v399_v2 }
   0xb   :  { %370 = vmatpush3.bf16.msra.mxu0 %v399_v2  ;;  %395 = vmatpush3.bf16.msra.mxu1 %v399_v2 }
   0xc   :  { %371 = vmatprep.subr.bf16.mxu0 %v400_v5  ;;  %392 = vmatprep.subr.bf16.mxu1 %v400_v5 }
   0xf   :  { %372 = vmatpush3.bf16.msra.mxu0 %v400_v5  ;;  %396 = vmatpush3.bf16.msra.mxu1 %v400_v5 }
  0x12   :  { %374 = vmatmul.mubr.msk.bf16.vlgmr.msra.gmra.mrb[0].mxu0 %vm110_vm0, %v403_v6  ;;  %382 = vmatmul.mubr.msk.bf16.vlgmr.msra.gmra.mrb[0].mxu1 %vm110_vm0, %v404_v7 }
  0x13   :  { %377 = vmatprep.mubr.msk.bf16.mxu0 %vm110_vm0, %v405_v8  ;;  %385 = vmatprep.mubr.msk.bf16.mxu1 %vm110_vm0, %v406_v9 }
  0x1a   :  { %378 = vmatmul.mubr.msk.bf16.gmra.mrb[4].mxu0 %vm110_vm0, %v407_v10  ;;  %386 = vmatmul.mubr.msk.bf16.gmra.mrb[4].mxu1 %vm110_vm0, %v408_v11 }
  0xe5   :  { %v375_v13 = vpop.f32.mrb[0].mxu0  ;;  %v383_v14 = vpop.f32.mrb[0].mxu1 }
  0xe6   :  { %v178_v15 = vadd.f32 %v375_v13, %v540_v12  ;;  %v210_v16 = vadd.f32 %v383_v14, %v540_v12  ;;  %v169_v17 = vpop.f32.mrb[1].mxu0  ;;  %v201_v18 = vpop.f32.mrb[1].mxu1 }
  0xe7   :  { %v170_v19 = vadd.f32 %v540_v12, %v169_v17  ;;  %v202_v20 = vadd.f32 %v540_v12, %v201_v18  ;;  %v376_v21 = vpop.f32.mrb[2].mxu0  ;;  %v384_v22 = vpop.f32.mrb[2].mxu1 }
  0xe8   :  { %v234_v23 = vsub.f32 0.0, %v178_v15  ;;  %v242_v24 = vsub.f32 0.0, %v210_v16  ;;  %v181_v25 = vadd.f32 %v376_v21, %v540_v12  ;;  %v213_v26 = vadd.f32 %v384_v22, %v540_v12  ;;  %v172_v27 = vpop.f32.mrb[3].mxu0  ;;  %v204_v28 = vpop.f32.mrb[3].mxu1 }
  0xe9   :  { %v232_v29 = vsub.f32 0.0, %v170_v19  ;;  %v240_v30 = vsub.f32 0.0, %v202_v20  ;;  %v173_v31 = vadd.f32 %v540_v12, %v172_v27  ;;  %v205_v32 = vadd.f32 %v540_v12, %v204_v28 }
  0xea   :  { %v252_v33 = vmul.f32 1.442695, %v234_v23  ;;  %v268_v34 = vmul.f32 1.442695, %v242_v24  ;;  %v235_v35 = vsub.f32 0.0, %v181_v25  ;;  %v243_v36 = vsub.f32 0.0, %v213_v26 }
  0xeb   :  { %v248_v37 = vmul.f32 1.442695, %v232_v29  ;;  %v264_v38 = vmul.f32 1.442695, %v240_v30  ;;  %v233_v39 = vsub.f32 0.0, %v173_v31  ;;  %v241_v40 = vsub.f32 0.0, %v205_v32 }
  0xec   :  { %409 = vpow2.f32 %v252_v33  ;;  %v254_v41 = vmul.f32 1.442695, %v235_v35  ;;  %v270_v42 = vmul.f32 1.442695, %v243_v36 }
  0xed   :  { %411 = vpow2.f32 %v268_v34  ;;  %v379_v43 = vpop.f32.mrb[4].mxu0  ;;  %v387_v44 = vpop.f32.mrb[4].mxu1  ;;  %v250_v45 = vmul.f32 1.442695, %v233_v39  ;;  %v266_v50 = vmul.f32 1.442695, %v241_v40 }
  0xee   :  { %413 = vpow2.f32 %v248_v37  ;;  %v194_v46 = vadd.f32 %v379_v43, %v540_v12  ;;  %v226_v47 = vadd.f32 %v387_v44, %v540_v12  ;;  %v185_v48 = vpop.f32.mrb[5].mxu0  ;;  %v217_v49 = vpop.f32.mrb[5].mxu1 }
  0xef   :  { %415 = vpow2.f32 %v264_v38  ;;  %v186_v51 = vadd.f32 %v540_v12, %v185_v48  ;;  %v218_v52 = vadd.f32 %v540_v12, %v217_v49  ;;  %v380_v53 = vpop.f32.mrb[6].mxu0  ;;  %v388_v54 = vpop.f32.mrb[6].mxu1 }
  0xf0   :  { %417 = vpow2.f32 %v254_v41  ;;  %v238_v55 = vsub.f32 0.0, %v194_v46  ;;  %v246_v56 = vsub.f32 0.0, %v226_v47  ;;  %v197_v57 = vadd.f32 %v380_v53, %v540_v12  ;;  %v188_v58 = vpop.f32.mrb[7].mxu0  ;;  %v220_v59 = vpop.f32.mrb[7].mxu1 }
  0xf1   :  { %419 = vpow2.f32 %v270_v42  ;;  %v236_v60 = vsub.f32 0.0, %v186_v51  ;;  %v244_v61 = vsub.f32 0.0, %v218_v52  ;;  %v229_v14 = vadd.f32 %v388_v54, %v540_v12 }
  0xf2   :  { %421 = vpow2.f32 %v250_v45  ;;  %v260_v62 = vmul.f32 1.442695, %v238_v55  ;;  %v276_v63 = vmul.f32 1.442695, %v246_v56  ;;  %v239_v0 = vsub.f32 0.0, %v197_v57 }
  0xf3   :  { %423 = vpow2.f32 %v266_v50  ;;  %v256_v1 = vmul.f32 1.442695, %v236_v60  ;;  %v272_v2 = vmul.f32 1.442695, %v244_v61  ;;  %v189_v17 = vadd.f32 %v540_v12, %v188_v58 }
  0xf4   :  { %425 = vpow2.f32 %v260_v62  ;;  %v262_v3 = vmul.f32 1.442695, %v239_v0  ;;  %v221_v20 = vadd.f32 %v540_v12, %v220_v59  ;;  %v247_v25 = vsub.f32 0.0, %v229_v14 }
  0xf5   :  { %427 = vpow2.f32 %v276_v63  ;;  %v237_v28 = vsub.f32 0.0, %v189_v17 }
  0xf6   :  { %v410_v4 = vpop.eup %409  ;;  %429 = vpow2.f32 %v256_v1  ;;  %v245_v31 = vsub.f32 0.0, %v221_v20  ;;  %v278_v35 = vmul.f32 1.442695, %v247_v25 }
  0xf7   :  { %v412_v5 = vpop.eup %411  ;;  %v282_v6 = vadd.f32 1.0, %v410_v4  ;;  %431 = vpow2.f32 %v272_v2  ;;  %v258_v38 = vmul.f32 1.442695, %v237_v28 }
  0xf8   :  { %v414_v7 = vpop.eup %413  ;;  %v290_v8 = vadd.f32 1.0, %v412_v5  ;;  %433 = vpow2.f32 %v262_v3  ;;  %v274_v40 = vmul.f32 1.442695, %v245_v31 }
  0xf9   :  { %v416_v9 = vpop.eup %415  ;;  %435 = vrcp.f32 %v282_v6  ;;  %v280_v10 = vadd.f32 1.0, %v414_v7 }
  0xfa   :  { %v418_v11 = vpop.eup %417  ;;  %437 = vrcp.f32 %v290_v8  ;;  %v288_v13 = vadd.f32 1.0, %v416_v9 }
  0xfb   :  { %v420_v15 = vpop.eup %419  ;;  %439 = vrcp.f32 %v280_v10  ;;  %v283_v16 = vadd.f32 1.0, %v418_v11 }
  0xfc   :  { %v422_v18 = vpop.eup %421  ;;  %441 = vrcp.f32 %v288_v13  ;;  %v291_v19 = vadd.f32 1.0, %v420_v15 }
  0xfd   :  { %v424_v21 = vpop.eup %423  ;;  %443 = vrcp.f32 %v283_v16  ;;  %v281_v22 = vadd.f32 1.0, %v422_v18 }
  0xfe   :  { %v426_v23 = vpop.eup %425  ;;  %445 = vrcp.f32 %v291_v19  ;;  %v289_v24 = vadd.f32 1.0, %v424_v21 }
  0xff   :  { %v428_v26 = vpop.eup %427  ;;  %447 = vrcp.f32 %v281_v22  ;;  %v286_v27 = vadd.f32 1.0, %v426_v23 }
 0x100   :  { %v430_v29 = vpop.eup %429  ;;  %449 = vrcp.f32 %v289_v24  ;;  %v294_v30 = vadd.f32 1.0, %v428_v26 }
 0x101   :  { %v432_v32 = vpop.eup %431  ;;  %451 = vrcp.f32 %v286_v27  ;;  %v284_v33 = vadd.f32 1.0, %v430_v29 }
 0x102   :  { %v434_v34 = vpop.eup %433  ;;  %453 = vrcp.f32 %v294_v30  ;;  %v292_v12 = vadd.f32 1.0, %v432_v32 }
 0x103   :  { %v436_v36 = vpop.eup %435  ;;  %455 = vrcp.f32 %v284_v33  ;;  %v287_v37 = vadd.f32 1.0, %v434_v34 }
 0x104   :  { %v438_v39 = vpop.eup %437  ;;  %314 = vst [vmem:[%s609_s3 + $0x10] sm:$0xff] %v436_v36  ;;  %457 = vrcp.f32 %v292_v12 }
 0x105   :  { %v440_v41 = vpop.eup %439  ;;  %322 = vst [vmem:[%s609_s3 + $0x50] sm:$0xff] %v438_v39  ;;  %459 = vrcp.f32 %v287_v37 }
 0x106   :  { %v442_v42 = vpop.eup %441  ;;  %312 = vst [vmem:[%s609_s3] sm:$0xff] %v440_v41  ;;  %461 = vpow2.f32 %v278_v35 }
 0x107   :  { %v444_v43 = vpop.eup %443  ;;  %320 = vst [vmem:[%s609_s3 + $0x40] sm:$0xff] %v442_v42  ;;  %463 = vpow2.f32 %v258_v38 }
 0x108   :  { %v446_v44 = vpop.eup %445  ;;  %315 = vst [vmem:[%s609_s3 + $0x18] sm:$0xff] %v444_v43  ;;  %465 = vpow2.f32 %v274_v40 }
 0x109   :  { %v448_v45 = vpop.eup %447  ;;  %323 = vst [vmem:[%s609_s3 + $0x58] sm:$0xff] %v446_v44 }
 0x10a   :  { %v450_v46 = vpop.eup %449  ;;  %313 = vst [vmem:[%s609_s3 + $0x8] sm:$0xff] %v448_v45 }
 0x10b   :  { %v452_v47 = vpop.eup %451  ;;  %321 = vst [vmem:[%s609_s3 + $0x48] sm:$0xff] %v450_v46 }
 0x10c   :  { %v454_v48 = vpop.eup %453  ;;  %318 = vst [vmem:[%s609_s3 + $0x30] sm:$0xff] %v452_v47 }
 0x10d   :  { %v456_v49 = vpop.eup %455  ;;  %326 = vst [vmem:[%s609_s3 + $0x70] sm:$0xff] %v454_v48 }
 0x10e   :  { %v458_v50 = vpop.eup %457  ;;  %316 = vst [vmem:[%s609_s3 + $0x20] sm:$0xff] %v456_v49 }
 0x10f   :  { %v460_v51 = vpop.eup %459  ;;  %324 = vst [vmem:[%s609_s3 + $0x60] sm:$0xff] %v458_v50 }
 0x110   :  { %v462_v52 = vpop.eup %461  ;;  %319 = vst [vmem:[%s609_s3 + $0x38] sm:$0xff] %v460_v51 }
 0x111   :  { %v464_v53 = vpop.eup %463  ;;  %v295_v54 = vadd.f32 1.0, %v462_v52 }
 0x112   :  { %v466_v55 = vpop.eup %465  ;;  %v285_v56 = vadd.f32 1.0, %v464_v53 }
 0x113   :  { %467 = vrcp.f32 %v295_v54  ;;  %v293_v57 = vadd.f32 1.0, %v466_v55 }
 0x114   :  { %469 = vrcp.f32 %v285_v56 }
 0x115   :  { %471 = vrcp.f32 %v293_v57 }
 0x11d   :  { %v468_v58 = vpop.eup %467 }
 0x11e   :  { %v470_v59 = vpop.eup %469  ;;  %327 = vst [vmem:[%s609_s3 + $0x78] sm:$0xff] %v468_v58 }
 0x11f   :  { %v472_v60 = vpop.eup %471  ;;  %317 = vst [vmem:[%s609_s3 + $0x28] sm:$0xff] %v470_v59 }
 0x120   :  { %325 = vst [vmem:[%s609_s3 + $0x68] sm:$0xff] %v472_v60 }

</bundles_post_ra>
